<compile_context>
chip_gen: v7x
topology: tpu7x:2x2x1
jax: 0.10.0
libtpu: 0.0.40
codegen_flags: <defaults>
</compile_context>

<pallas_src>
import jax
import jax.numpy as jnp
from jax import lax
from jax.experimental import pallas as pl
from jax.experimental.pallas import tpu as pltpu


def _round_up(x, m):
    return -(-x // m) * m


def _fused_mlp_kernel(x_ref, wg_ref, wu_ref, wd_ref, o_ref, acc_ref):
    """One (tm, H) output row tile; reduction over intermediate (ti) tiles."""
    j = pl.program_id(2)

    @pl.when(j == 0)
    def _init():
        acc_ref[...] = jnp.zeros_like(acc_ref)

    x = x_ref[...]                                             # (tm, H) bf16
    dn = (((1,), (1,)), ((), ()))                              # contract on H (trans_b)
    g = lax.dot_general(x, wg_ref[...], dn,
                        preferred_element_type=jnp.float32)    # (tm, ti) f32
    u = lax.dot_general(x, wu_ref[...], dn,
                        preferred_element_type=jnp.float32)    # (tm, ti) f32

    # silu(g) * u in f32: exp + approx reciprocal on the EUP slot, muls on VPU.
    sig = pl.reciprocal(1.0 + jnp.exp(-g), approx=True)
    h = (g * sig * u).astype(x.dtype)                          # bf16 for the MXU

    # Down-projection partial sum for this intermediate tile.
    acc_ref[...] += jnp.dot(h, wd_ref[...], preferred_element_type=jnp.float32)

    @pl.when(j == pl.num_programs(2) - 1)
    def _finalize():
        o_ref[...] = acc_ref[...].astype(o_ref.dtype)


def _vmem_budget_bytes():
    """Conservative per-core VMEM budget (v7x: 64 MiB physical; v4/v5e/v6e: 128)."""
    try:
        kind = jax.devices()[0].device_kind.lower()
    except Exception:  # pragma: no cover
        kind = ""
    if any(t in kind for t in ("v4", "v5", "v6")):
        return 80 << 20
    return 44 << 20


def fused_mlp(x, w_gate, w_up, w_down, *, tm=512, ti=512, split_reduction=None):
    """Fused SwiGLU MLP.

    w_gate, w_up: (I, H) torch-native layout; w_down: (I, H) = down weight.T.
    """
    H = x.shape[-1]
    I = w_gate.shape[0]
    assert w_gate.shape == (I, H) and w_up.shape == (I, H) and w_down.shape == (I, H)
    assert H % 128 == 0, "hidden_size must be a multiple of 128"
    assert I % 128 == 0, "intermediate_size must be a multiple of 128"

    orig_shape = x.shape
    x2 = x.reshape(-1, H)
    M = x2.shape[0]
    itemsize = jnp.dtype(x.dtype).itemsize

    # ---- Row tile: as big as useful (arithmetic intensity ~ tm); 256-multiple
    # for the 256-wide MXUs when large, rounded UP to 16 (bf16 packing) when small.
    m16 = _round_up(M, 16)
    if m16 <= tm:
        tm = m16                                    # one row tile covers all rows
    elif tm >= 256:
        tm = (tm // 256) * 256
    else:
        tm = _round_up(max(tm, 16), 16)

    # ---- Intermediate tile: largest multiple of 128 dividing I, <= request.
    ti = max(128, (min(ti, I) // 128) * 128)
    while I % ti:
        ti -= 128

    # ---- Fit tiles into the VMEM budget (double-buffered streams + f32 acc),
    # preferring to keep tm (it sets FLOP/byte), then shrinking ti.
    budget = _vmem_budget_bytes()

    def vmem_bytes(tm_, ti_):
        dbl = 2  # double buffering
        return (dbl * tm_ * H * itemsize          # x tile
                + dbl * 3 * ti_ * H * itemsize    # gate / up / down weight tiles
                + dbl * tm_ * H * itemsize        # output tile
                + tm_ * H * 4)                    # f32 accumulator

    for _ in range(64):
        if vmem_bytes(tm, ti) <= budget:
            break
        if ti > 256:
            ti //= 2
        elif tm > 256:
            tm = max(256, ((tm // 2) // 256) * 256)
        elif ti > 128:
            ti //= 2
        elif tm > 16:
            tm = max(16, _round_up(tm // 2, 16))
        else:
            break

    m_pad = _round_up(M, tm)
    if m_pad != M:
        x2 = jnp.pad(x2, ((0, m_pad - M), (0, 0)))

    num_m = m_pad // tm
    num_j = I // ti

    # ---- Decode regime: a single row tile leaves the second TensorCore idle
    # under "parallel"-over-M; split the I reduction across a leading parallel
    # axis instead and sum the partials in the wrapper.
    if split_reduction is None:
        split_reduction = (num_m == 1) and (num_j % 2 == 0) and (num_j >= 2)
    n_split = 2 if split_reduction else 1
    nj = num_j // n_split

    grid = (n_split, num_m, nj)

    flops = 6 * M * H * I
    bytes_accessed = (m_pad * H * itemsize                 # activations in
                      + num_m * 3 * I * H * itemsize       # weights per row tile
                      + n_split * m_pad * H * itemsize)    # output (partials)
    cost = pl.CostEstimate(flops=flops, transcendentals=M * I,
                           bytes_accessed=bytes_accessed)

    vmem_limit = min(int(1.2 * vmem_bytes(tm, ti)) + (2 << 20), 100 << 20)
    vmem_limit = max(vmem_limit, 32 << 20)

    out = pl.pallas_call(
        _fused_mlp_kernel,
        out_shape=jax.ShapeDtypeStruct((n_split, m_pad, H), x.dtype),
        grid_spec=pltpu.PrefetchScalarGridSpec(
            num_scalar_prefetch=0,
            grid=grid,
            in_specs=[
                pl.BlockSpec((tm, H), lambda c, i, j: (i, 0)),           # x rows
                pl.BlockSpec((ti, H), lambda c, i, j: (c * nj + j, 0)),  # gate rows
                pl.BlockSpec((ti, H), lambda c, i, j: (c * nj + j, 0)),  # up rows
                pl.BlockSpec((ti, H), lambda c, i, j: (c * nj + j, 0)),  # down rows
            ],
            out_specs=pl.BlockSpec((None, tm, H), lambda c, i, j: (c, i, 0)),
            scratch_shapes=[pltpu.VMEM((tm, H), jnp.float32)],
        ),
        compiler_params=pltpu.CompilerParams(
            dimension_semantics=("parallel", "parallel", "arbitrary"),
            vmem_limit_bytes=vmem_limit,
        ),
        cost_estimate=cost,
    )(x2, w_gate, w_up, w_down)

    if n_split > 1:
        out = out.astype(jnp.float32).sum(axis=0).astype(x.dtype)
    else:
        out = out[0]
    if m_pad != M:
        out = out[:M]
    return out.reshape(orig_shape[:-1] + (H,))


def _reference(x, w_gate, w_up, w_down):
    """Pure-JAX reference mirroring the PyTorch forward (f32 math, bf16 h cast)."""
    hp = lax.Precision.HIGHEST
    xf = x.astype(jnp.float32)
    g = jnp.dot(xf, w_gate.astype(jnp.float32).T, precision=hp)
    u = jnp.dot(xf, w_up.astype(jnp.float32).T, precision=hp)
    h = (jax.nn.silu(g) * u).astype(x.dtype).astype(jnp.float32)
    out = jnp.dot(h, w_down.astype(jnp.float32), precision=hp)
    return out.astype(x.dtype)


if __name__ == "__main__":
    root = jax.random.PRNGKey(0)
    dtype = jnp.bfloat16

    def run_case(B, S, H, I, **kw):
        ks = jax.random.split(jax.random.fold_in(root, 7919 * H + I), 4)
        x = jax.random.normal(ks[0], (B, S, H), dtype=jnp.float32).astype(dtype)
        # gate/up: torch-native (I, H); down: torch weight.T -> (I, H).
        w_gate = (0.02 * jax.random.normal(ks[1], (I, H), jnp.float32)).astype(dtype)
        w_up = (0.02 * jax.random.normal(ks[2], (I, H), jnp.float32)).astype(dtype)
        w_down = (0.02 * jax.random.normal(ks[3], (I, H), jnp.float32)).astype(dtype)

        out = jax.block_until_ready(fused_mlp(x, w_gate, w_up, w_down, **kw))
        ref = _reference(x.reshape(-1, H), w_gate, w_up, w_down).reshape(B, S, H)

        assert out.shape == (B, S, H), out.shape
        assert out.dtype == dtype, out.dtype
        err = float(jnp.max(jnp.abs(out.astype(jnp.float32) - ref.astype(jnp.float32))))
        assert err < 2e-2, f"case {(B, S, H, I)}: max abs err {err}"

    # Small shapes consistent with the module (hidden/intermediate scaled down).
    run_case(2, 8, 256, 512)                  # single row tile, single I tile
    run_case(2, 8, 256, 1024, ti=128)         # decode regime: 2-way reduction split
    run_case(5, 8, 128, 256, tm=16, ti=128)   # row padding + multiple M tiles + accum
    print("KERNEL_OK")
</pallas_src>

<mosaic_0001>
module attributes {stable_mosaic.version = 11 : i64} {
  func.func @_fused_mlp_kernel(%arg0: i32, %arg1: i32, %arg2: i32, %arg3: memref<16x256xbf16, #tpu.memory_space<vmem>>, %arg4: memref<512x256xbf16, #tpu.memory_space<vmem>>, %arg5: memref<512x256xbf16, #tpu.memory_space<vmem>>, %arg6: memref<512x256xbf16, #tpu.memory_space<vmem>>, %arg7: memref<1x16x256xbf16, #tpu.memory_space<vmem>>, %arg8: memref<16x256xf32, #tpu.memory_space<vmem>>) attributes {dimension_semantics = [#tpu.dimension_semantics<parallel>, #tpu.dimension_semantics<parallel>, #tpu.dimension_semantics<arbitrary>], iteration_bounds = array<i64: 1, 1, 1>, scalar_prefetch = 0 : i64, scratch_operands = 1 : i64, tpu.core_type = #tpu.core_type<tc>, window_params = [{transform_indices = @transform_0, window_bounds = array<i64: 16, 256>}, {transform_indices = @transform_1, window_bounds = array<i64: 512, 256>}, {transform_indices = @transform_2, window_bounds = array<i64: 512, 256>}, {transform_indices = @transform_3, window_bounds = array<i64: 512, 256>}, {transform_indices = @transform_4, window_bounds = array<i64: 1, 16, 256>}]} {
    %c0_i32 = arith.constant 0 : i32
    %0 = arith.cmpi eq, %arg2, %c0_i32 : i32
    %1 = arith.extui %0 : i1 to i32
    %c0_i32_0 = arith.constant 0 : i32
    %2 = arith.cmpi ne, %1, %c0_i32_0 : i32
    scf.if %2 {
      %cst_18 = arith.constant 0.000000e+00 : f32
      %25 = vector.broadcast %cst_18 : f32 to vector<16x256xf32>
      %c0_19 = arith.constant 0 : index
      %c0_20 = arith.constant 0 : index
      %26 = vector.load %arg8[%c0_19, %c0_20] : memref<16x256xf32, #tpu.memory_space<vmem>>, vector<16x256xf32>
      tpu.vector_store %arg8[%c0_19, %c0_20], %25 {strides = array<i32>} : memref<16x256xf32, #tpu.memory_space<vmem>>, vector<16x256xf32>,
    } else {
    }
    %c0 = arith.constant 0 : index
    %c0_1 = arith.constant 0 : index
    %3 = vector.load %arg3[%c0, %c0_1] : memref<16x256xbf16, #tpu.memory_space<vmem>>, vector<16x256xbf16>
    %c0_2 = arith.constant 0 : index
    %c0_3 = arith.constant 0 : index
    %4 = vector.load %arg4[%c0_2, %c0_3] : memref<512x256xbf16, #tpu.memory_space<vmem>>, vector<512x256xbf16>
    %cst = arith.constant dense<0.000000e+00> : vector<16x512xf32>
    %5 = tpu.matmul %3, %4, %cst {dimension_numbers = #tpu.dot_dimension_numbers<[1], [1], [0], [0], [0, 0, 1, 0], [], []>} : vector<16x256xbf16>, vector<512x256xbf16>, vector<16x512xf32> -> vector<16x512xf32>
    %c0_4 = arith.constant 0 : index
    %c0_5 = arith.constant 0 : index
    %6 = vector.load %arg5[%c0_4, %c0_5] : memref<512x256xbf16, #tpu.memory_space<vmem>>, vector<512x256xbf16>
    %cst_6 = arith.constant dense<0.000000e+00> : vector<16x512xf32>
    %7 = tpu.matmul %3, %6, %cst_6 {dimension_numbers = #tpu.dot_dimension_numbers<[1], [1], [0], [0], [0, 0, 1, 0], [], []>} : vector<16x256xbf16>, vector<512x256xbf16>, vector<16x512xf32> -> vector<16x512xf32>
    %cst_7 = arith.constant 0.000000e+00 : f32
    %8 = vector.broadcast %cst_7 : f32 to vector<16x512xf32>
    %9 = arith.subf %8, %5 : vector<16x512xf32>
    %10 = math.exp %9 : vector<16x512xf32>
    %cst_8 = arith.constant 1.000000e+00 : f32
    %11 = vector.broadcast %cst_8 : f32 to vector<16x512xf32>
    %12 = arith.addf %11, %10 : vector<16x512xf32>
    %13 = tpu.reciprocal %12 {approx = true} : vector<16x512xf32> -> vector<16x512xf32>
    %14 = arith.mulf %5, %13 : vector<16x512xf32>
    %15 = arith.mulf %14, %7 : vector<16x512xf32>
    %16 = arith.truncf %15 : vector<16x512xf32> to vector<16x512xbf16>
    %c0_9 = arith.constant 0 : index
    %c0_10 = arith.constant 0 : index
    %17 = vector.load %arg8[%c0_9, %c0_10] : memref<16x256xf32, #tpu.memory_space<vmem>>, vector<16x256xf32>
    %c0_11 = arith.constant 0 : index
    %c0_12 = arith.constant 0 : index
    %18 = vector.load %arg6[%c0_11, %c0_12] : memref<512x256xbf16, #tpu.memory_space<vmem>>, vector<512x256xbf16>
    %cst_13 = arith.constant dense<0.000000e+00> : vector<16x256xf32>
    %19 = tpu.matmul %16, %18, %cst_13 {dimension_numbers = #tpu.dot_dimension_numbers<[1], [0], [0], [1], [0, 0, 1, 1], [], []>} : vector<16x512xbf16>, vector<512x256xbf16>, vector<16x256xf32> -> vector<16x256xf32>
    %20 = arith.addf %17, %19 : vector<16x256xf32>
    %c0_14 = arith.constant 0 : index
    %c0_15 = arith.constant 0 : index
    %21 = vector.load %arg8[%c0_14, %c0_15] : memref<16x256xf32, #tpu.memory_space<vmem>>, vector<16x256xf32>
    tpu.vector_store %arg8[%c0_14, %c0_15], %20 {strides = array<i32>} : memref<16x256xf32, #tpu.memory_space<vmem>>, vector<16x256xf32>,
    %c0_i32_16 = arith.constant 0 : i32
    %22 = arith.cmpi eq, %arg2, %c0_i32_16 : i32
    %23 = arith.extui %22 : i1 to i32
    %c0_i32_17 = arith.constant 0 : i32
    %24 = arith.cmpi ne, %23, %c0_i32_17 : i32
    scf.if %24 {
      %c0_18 = arith.constant 0 : index
      %c0_19 = arith.constant 0 : index
      %25 = vector.load %arg8[%c0_18, %c0_19] : memref<16x256xf32, #tpu.memory_space<vmem>>, vector<16x256xf32>
      %26 = arith.truncf %25 : vector<16x256xf32> to vector<16x256xbf16>
      %c0_20 = arith.constant 0 : index
      %c0_21 = arith.constant 0 : index
      %c0_22 = arith.constant 0 : index
      %27 = vector.load %arg7[%c0_20, %c0_21, %c0_22] : memref<1x16x256xbf16, #tpu.memory_space<vmem>>, vector<1x16x256xbf16>
      %28 = vector.shape_cast %27 : vector<1x16x256xbf16> to vector<16x256xbf16>
      %29 = vector.shape_cast %26 : vector<16x256xbf16> to vector<1x16x256xbf16>
      tpu.vector_store %arg7[%c0_20, %c0_21, %c0_22], %29 {strides = array<i32>} : memref<1x16x256xbf16, #tpu.memory_space<vmem>>, vector<1x16x256xbf16>,
    } else {
    }
    return
  }
  func.func @transform_0(%arg0: i32, %arg1: i32, %arg2: i32) -> (i32, i32) {
    %c0_i32 = arith.constant 0 : i32
    %c0_i32_0 = arith.constant 0 : i32
    return %arg1, %c0_i32 : i32, i32
  }
  func.func @transform_1(%arg0: i32, %arg1: i32, %arg2: i32) -> (i32, i32) {
    %c1_i32 = arith.constant 1 : i32
    %0 = arith.muli %arg0, %c1_i32 : i32
    %1 = arith.addi %0, %arg2 : i32
    %c0_i32 = arith.constant 0 : i32
    %c0_i32_0 = arith.constant 0 : i32
    return %1, %c0_i32 : i32, i32
  }
  func.func @transform_2(%arg0: i32, %arg1: i32, %arg2: i32) -> (i32, i32) {
    %c1_i32 = arith.constant 1 : i32
    %0 = arith.muli %arg0, %c1_i32 : i32
    %1 = arith.addi %0, %arg2 : i32
    %c0_i32 = arith.constant 0 : i32
    %c0_i32_0 = arith.constant 0 : i32
    return %1, %c0_i32 : i32, i32
  }
  func.func @transform_3(%arg0: i32, %arg1: i32, %arg2: i32) -> (i32, i32) {
    %c1_i32 = arith.constant 1 : i32
    %0 = arith.muli %arg0, %c1_i32 : i32
    %1 = arith.addi %0, %arg2 : i32
    %c0_i32 = arith.constant 0 : i32
    %c0_i32_0 = arith.constant 0 : i32
    return %1, %c0_i32 : i32, i32
  }
  func.func @transform_4(%arg0: i32, %arg1: i32, %arg2: i32) -> (i32, i32, i32) {
    %c0_i32 = arith.constant 0 : i32
    %c0_i32_0 = arith.constant 0 : i32
    return %arg0, %arg1, %c0_i32 : i32, i32, i32
  }
}

</mosaic_0001>

<bundles_post_ra>
// kernel: tpu_custom_call.1
= control target key start
LH: loop header
LB: loop body
LE: loop exit
PB: predicated region body
PF: predicated region fallthrough
CT: control target
= control target key end

     0   :  { %9 = vsyncpa [#allocation4], 0  ;;  %s2451_s0 = inlined_call_operand.hbm [shape: bf16[16,256], index: 0, kind: input, shape index: {}]   ;;  %s2452_s1 = inlined_call_operand.hbm [shape: bf16[512,256], index: 1, kind: input, shape index: {}]   ;;  %s2453_s2 = inlined_call_operand.hbm [shape: bf16[512,256], index: 2, kind: input, shape index: {}]   ;;  %s2454_s3 = inlined_call_operand.hbm [shape: bf16[512,256], index: 3, kind: input, shape index: {}]   ;;  %s2455_s4 = inlined_call_operand.hbm [shape: bf16[1,16,256], index: 4, kind: output, shape index: {}]  }
   0x1   :  { %10 = vsyncpa [#allocation7], 0 }
   0x2   :  { %11 = vsyncpa [#allocation10], 0 }
   0x3   :  { %12 = vsyncpa [#allocation5], 0  ;;  %s2286_s15 = smov [#allocation6]   ;;  %s2287_s17 = smov [#allocation3]  }
   0x4   :  { %s35_s16 = sshll.u32 %s2286_s15, 4  ;;  %s18_s18 = sshll.u32 %s2287_s17, 4  ;;  %s36_s16 = int_to_ptr.vmem [resolvable:$true] %s35_s16  ;;  %s2318_s18 = int_to_ptr.vmem [resolvable:$true] %s18_s18 }
   0x5   :  { %s2168_s21 = scalar_lea.hbm %s2452_s1, 8192 }
   0x6   :  { %p2169_p0 = scmp.ne.s32.totalorder %s2452_s1, %s2168_s21  ;;  %p2172_p1 = scmp.lt.u32.totalorder %s2168_s21, %s2452_s1 }
   0x8   :  { %p2174_p2 = pnand %p2172_p1, %p2169_p0 }
   0xa   :  { %2177 = shalt.err (!%p2174_p2)
}
   0xb   :  { %s2178_s26 = scalar_lea.vmem %s36_s16, 8192  ;;  %p2183_p4 = scmp.lt.s32.totalorder %s36_s16, %s36_s16 }
   0xc   :  { %p2179_p3 = scmp.ne.s32.totalorder %s36_s16, %s2178_s26  ;;  %p2184_p5 = scmp.lt.s32.totalorder %s2178_s26, %s2178_s26 }
   0xe   :  { %p2185_p6 = por %p2184_p5, %p2183_p4 }
  0x10   :  { %p2186_p7 = pnand %p2185_p6, %p2179_p3 }
  0x12   :  { %2189 = shalt.err (!%p2186_p7)
}
  0x13   :  { %s2288_s27 = smov 128   ;;  %s2289_s28 = smov 8  }
  0x14   :  { %41 = dma.hbm_to_vmem [thread:$0]  %s2452_s1, 8192, %s36_s16, [#allocation7], %s2288_s27, %s2288_s27, %s2289_s28  }
  0x15   :  { %s2190_s7 = scalar_lea.hbm %s2451_s0, 256 }
  0x16   :  { %p2191_p8 = scmp.ne.s32.totalorder %s2451_s0, %s2190_s7  ;;  %p2194_p9 = scmp.lt.u32.totalorder %s2190_s7, %s2451_s0 }
  0x18   :  { %p2196_p10 = pnand %p2194_p9, %p2191_p8 }
  0x1a   :  { %2199 = shalt.err (!%p2196_p10)
}
  0x1b   :  { %s2200_s12 = scalar_lea.vmem %s2318_s18, 256  ;;  %p2205_p12 = scmp.lt.s32.totalorder %s2318_s18, %s2318_s18 }
  0x1c   :  { %p2201_p11 = scmp.ne.s32.totalorder %s2318_s18, %s2200_s12  ;;  %p2206_p13 = scmp.lt.s32.totalorder %s2200_s12, %s2200_s12 }
  0x1e   :  { %p2207_p0 = por %p2206_p13, %p2205_p12 }
  0x20   :  { %p2208_p1 = pnand %p2207_p0, %p2201_p11 }
  0x22   :  { %2211 = shalt.err (!%p2208_p1)
}
  0x23   :  { %24 = dma.hbm_to_vmem [thread:$0]  %s2451_s0, 256, %s2318_s18, [#allocation4], %s2288_s27, %s2288_s27, %s2289_s28  }
  0x24   :  { %s2290_s14 = smov [#allocation8]   ;;  %s2291_s16 = smov [#allocation9]  }
  0x25   :  { %s52_s15 = sshll.u32 %s2290_s14, 4  ;;  %s69_s17 = sshll.u32 %s2291_s16, 4  ;;  %s53_s15 = int_to_ptr.vmem [resolvable:$true] %s52_s15  ;;  %s2355_s17 = int_to_ptr.vmem [resolvable:$true] %s69_s17 }
  0x26   :  { %s2212_s21 = scalar_lea.hbm %s2453_s2, 8192 }
  0x27   :  { %p2213_p2 = scmp.ne.s32.totalorder %s2453_s2, %s2212_s21  ;;  %p2216_p3 = scmp.lt.u32.totalorder %s2212_s21, %s2453_s2 }
  0x29   :  { %p2218_p4 = pnand %p2216_p3, %p2213_p2 }
  0x2b   :  { %2221 = shalt.err (!%p2218_p4)
}
  0x2c   :  { %s2222_s0 = scalar_lea.vmem %s53_s15, 8192  ;;  %p2227_p6 = scmp.lt.s32.totalorder %s53_s15, %s53_s15 }
  0x2d   :  { %p2223_p5 = scmp.ne.s32.totalorder %s53_s15, %s2222_s0  ;;  %p2228_p7 = scmp.lt.s32.totalorder %s2222_s0, %s2222_s0 }
  0x2f   :  { %p2229_p8 = por %p2228_p7, %p2227_p6 }
  0x31   :  { %p2230_p9 = pnand %p2229_p8, %p2223_p5 }
  0x33   :  { %2233 = shalt.err (!%p2230_p9)
}
  0x34   :  { %58 = dma.hbm_to_vmem [thread:$0]  %s2453_s2, 8192, %s53_s15, [#allocation7], %s2288_s27, %s2288_s27, %s2289_s28  }
  0x35   :  { %s2234_s5 = scalar_lea.hbm %s2454_s3, 8192 }
  0x36   :  { %p2235_p10 = scmp.ne.s32.totalorder %s2454_s3, %s2234_s5  ;;  %p2238_p11 = scmp.lt.u32.totalorder %s2234_s5, %s2454_s3 }
  0x38   :  { %p2240_p12 = pnand %p2238_p11, %p2235_p10 }
  0x3a   :  { %2243 = shalt.err (!%p2240_p12)
}
  0x3b   :  { %s2244_s10 = scalar_lea.vmem %s2355_s17, 8192  ;;  %p2249_p0 = scmp.lt.s32.totalorder %s2355_s17, %s2355_s17 }
  0x3c   :  { %p2245_p13 = scmp.ne.s32.totalorder %s2355_s17, %s2244_s10  ;;  %p2250_p1 = scmp.lt.s32.totalorder %s2244_s10, %s2244_s10 }
  0x3e   :  { %p2251_p2 = por %p2250_p1, %p2249_p0 }
  0x40   :  { %p2252_p3 = pnand %p2251_p2, %p2245_p13 }
  0x42   :  { %2255 = shalt.err (!%p2252_p3)
}
  0x43   :  { %75 = dma.hbm_to_vmem [thread:$0]  %s2454_s3, 8192, %s2355_s17, [#allocation10], %s2288_s27, %s2288_s27, %s2289_s28  }
  0x44   :  { %2278 = dma.done.wait [#allocation4], 256  }
  0x45   :  { %2279 = vsyncadd [#allocation4], 4294967040 }
  0x46   :  { %2280 = dma.done.wait [#allocation7], 16384  }
  0x47   :  { %2281 = vsyncadd [#allocation7], 4294950912 }
  0x48   :  { %2282 = dma.done.wait [#allocation10], 8192  }
  0x49   :  { %2283 = vsyncadd [#allocation10], 4294959104  ;;  %v1845_v0 = vld [vmem:[#allocation6 + $0x4] ss:$8 sps:$4 sm:$0xff]   ;;  %v1849_v2 = vld [vmem:[#allocation6] ss:$8 sps:$4 sm:$0xff]  }
  0x4a   :  { %v1847_v1 = vld [vmem:[#allocation6 + $0x104] ss:$8 sps:$4 sm:$0xff]   ;;  %498 = vmatprep.subr.bf16.mxu0 %v1845_v0  ;;  %v1850_v3 = vld [vmem:[#allocation6 + $0x100] ss:$8 sps:$4 sm:$0xff]   ;;  %v1851_v4 = vld [vmem:[#allocation6 + $0x14] ss:$8 sps:$4 sm:$0xff]  }
  0x4b   :  { %541 = vmatprep.subr.bf16.mxu1 %v1847_v1  ;;  %499 = vmatpush1.bf16.xpose.msra.mxu0 %v1849_v2  ;;  %v1853_v5 = vld [vmem:[#allocation6 + $0x114] ss:$8 sps:$4 sm:$0xff]   ;;  %v1855_v6 = vld [vmem:[#allocation6 + $0x10] ss:$8 sps:$4 sm:$0xff]   ;;  %v1857_v8 = vld [vmem:[#allocation6 + $0x24] ss:$8 sps:$4 sm:$0xff]  }
  0x4c   :  { %542 = vmatpush1.bf16.xpose.msra.mxu1 %v1850_v3  ;;  %500 = vmatprep.subr.bf16.mxu0 %v1851_v4  ;;  %v1856_v7 = vld [vmem:[#allocation6 + $0x110] ss:$8 sps:$4 sm:$0xff]   ;;  %v1859_v9 = vld [vmem:[#allocation6 + $0x124] ss:$8 sps:$4 sm:$0xff]   ;;  %v1861_v10 = vld [vmem:[#allocation6 + $0x20] ss:$8 sps:$4 sm:$0xff]  }
  0x4d   :  { %543 = vmatprep.subr.bf16.mxu1 %v1853_v5  ;;  %v1862_v11 = vld [vmem:[#allocation6 + $0x120] ss:$8 sps:$4 sm:$0xff]   ;;  %v1863_v12 = vld [vmem:[#allocation6 + $0x34] ss:$8 sps:$4 sm:$0xff]   ;;  %v1867_v14 = vld [vmem:[#allocation6 + $0x30] ss:$8 sps:$4 sm:$0xff]  }
  0x4e   :  { %v1865_v13 = vld [vmem:[#allocation6 + $0x134] ss:$8 sps:$4 sm:$0xff]   ;;  %v1868_v15 = vld [vmem:[#allocation6 + $0x130] ss:$8 sps:$4 sm:$0xff]   ;;  %v1869_v16 = vld [vmem:[#allocation6 + $0x44] ss:$8 sps:$4 sm:$0xff]  }
  0x4f   :  { %v1871_v17 = vld [vmem:[#allocation6 + $0x144] ss:$8 sps:$4 sm:$0xff]   ;;  %v1873_v18 = vld [vmem:[#allocation6 + $0x40] ss:$8 sps:$4 sm:$0xff]   ;;  %v1875_v20 = vld [vmem:[#allocation6 + $0x54] ss:$8 sps:$4 sm:$0xff]  }
  0x50   :  { %v1874_v19 = vld [vmem:[#allocation6 + $0x140] ss:$8 sps:$4 sm:$0xff]   ;;  %v1877_v21 = vld [vmem:[#allocation6 + $0x154] ss:$8 sps:$4 sm:$0xff]   ;;  %v1879_v22 = vld [vmem:[#allocation6 + $0x50] ss:$8 sps:$4 sm:$0xff]  }
  0x51   :  { %v1880_v23 = vld [vmem:[#allocation6 + $0x150] ss:$8 sps:$4 sm:$0xff]   ;;  %v1881_v24 = vld [vmem:[#allocation6 + $0x64] ss:$8 sps:$4 sm:$0xff]   ;;  %v2392_v26 = vld [vmem:[#allocation3 + $0x4] ss:$8 sps:$4 sm:$0xff]  }
  0x52   :  { %v1883_v25 = vld [vmem:[#allocation6 + $0x164] ss:$8 sps:$4 sm:$0xff]   ;;  %530 = vmatprep.mubr.bf16.mxu0 %v2392_v26  ;;  %573 = vmatprep.mubr.bf16.mxu1 %v2392_v26  ;;  %v1885_v27 = vld [vmem:[#allocation6 + $0x60] ss:$8 sps:$4 sm:$0xff]   ;;  %v1887_v29 = vld [vmem:[#allocation6 + $0x74] ss:$8 sps:$4 sm:$0xff]  }
  0x53   :  { %501 = vmatpush1.bf16.xpose.msra.mxu0 %v1855_v6  ;;  %v1886_v28 = vld [vmem:[#allocation6 + $0x160] ss:$8 sps:$4 sm:$0xff]   ;;  %v1889_v30 = vld [vmem:[#allocation6 + $0x174] ss:$8 sps:$4 sm:$0xff]   ;;  %v1891_v31 = vld [vmem:[#allocation6 + $0x70] ss:$8 sps:$4 sm:$0xff]  }
  0x54   :  { %544 = vmatpush1.bf16.xpose.msra.mxu1 %v1856_v7  ;;  %502 = vmatprep.subr.bf16.mxu0 %v1857_v8  ;;  %v1892_v32 = vld [vmem:[#allocation6 + $0x170] ss:$8 sps:$4 sm:$0xff]   ;;  %v1893_v33 = vld [vmem:[#allocation6 + $0x84] ss:$8 sps:$4 sm:$0xff]   ;;  %v1897_v35 = vld [vmem:[#allocation6 + $0x80] ss:$8 sps:$4 sm:$0xff]  }
  0x55   :  { %545 = vmatprep.subr.bf16.mxu1 %v1859_v9  ;;  %v1895_v34 = vld [vmem:[#allocation6 + $0x184] ss:$8 sps:$4 sm:$0xff]   ;;  %v1898_v36 = vld [vmem:[#allocation6 + $0x180] ss:$8 sps:$4 sm:$0xff]   ;;  %v1899_v37 = vld [vmem:[#allocation6 + $0x94] ss:$8 sps:$4 sm:$0xff]  }
  0x56   :  { %v1901_v38 = vld [vmem:[#allocation6 + $0x194] ss:$8 sps:$4 sm:$0xff]   ;;  %v1903_v39 = vld [vmem:[#allocation6 + $0x90] ss:$8 sps:$4 sm:$0xff]   ;;  %v1905_v41 = vld [vmem:[#allocation6 + $0xa4] ss:$8 sps:$4 sm:$0xff]  }
  0x57   :  { %v1904_v40 = vld [vmem:[#allocation6 + $0x190] ss:$8 sps:$4 sm:$0xff]   ;;  %v1907_v42 = vld [vmem:[#allocation6 + $0x1a4] ss:$8 sps:$4 sm:$0xff]   ;;  %v1909_v43 = vld [vmem:[#allocation6 + $0xa0] ss:$8 sps:$4 sm:$0xff]  }
  0x58   :  { %v1910_v44 = vld [vmem:[#allocation6 + $0x1a0] ss:$8 sps:$4 sm:$0xff]   ;;  %v1911_v45 = vld [vmem:[#allocation6 + $0xb4] ss:$8 sps:$4 sm:$0xff]   ;;  %v1915_v47 = vld [vmem:[#allocation6 + $0xb0] ss:$8 sps:$4 sm:$0xff]  }
  0x59   :  { %v1913_v46 = vld [vmem:[#allocation6 + $0x1b4] ss:$8 sps:$4 sm:$0xff]   ;;  %v1916_v48 = vld [vmem:[#allocation6 + $0x1b0] ss:$8 sps:$4 sm:$0xff]   ;;  %v1917_v49 = vld [vmem:[#allocation6 + $0xc4] ss:$8 sps:$4 sm:$0xff]  }
  0x5a   :  { %v1919_v50 = vld [vmem:[#allocation6 + $0x1c4] ss:$8 sps:$4 sm:$0xff]   ;;  %v1921_v51 = vld [vmem:[#allocation6 + $0xc0] ss:$8 sps:$4 sm:$0xff]   ;;  %v1923_v53 = vld [vmem:[#allocation6 + $0xd4] ss:$8 sps:$4 sm:$0xff]  }
  0x5b   :  { %503 = vmatpush1.bf16.xpose.msra.mxu0 %v1861_v10  ;;  %v1922_v52 = vld [vmem:[#allocation6 + $0x1c0] ss:$8 sps:$4 sm:$0xff]   ;;  %v1925_v54 = vld [vmem:[#allocation6 + $0x1d4] ss:$8 sps:$4 sm:$0xff]   ;;  %v1927_v55 = vld [vmem:[#allocation6 + $0xd0] ss:$8 sps:$4 sm:$0xff]  }
  0x5c   :  { %546 = vmatpush1.bf16.xpose.msra.mxu1 %v1862_v11  ;;  %504 = vmatprep.subr.bf16.mxu0 %v1863_v12  ;;  %v1928_v56 = vld [vmem:[#allocation6 + $0x1d0] ss:$8 sps:$4 sm:$0xff]   ;;  %v1929_v57 = vld [vmem:[#allocation6 + $0xe4] ss:$8 sps:$4 sm:$0xff]   ;;  %v1933_v59 = vld [vmem:[#allocation6 + $0xe0] ss:$8 sps:$4 sm:$0xff]  }
  0x5d   :  { %547 = vmatprep.subr.bf16.mxu1 %v1865_v13  ;;  %v1931_v58 = vld [vmem:[#allocation6 + $0x1e4] ss:$8 sps:$4 sm:$0xff]   ;;  %v1934_v60 = vld [vmem:[#allocation6 + $0x1e0] ss:$8 sps:$4 sm:$0xff]   ;;  %v1935_v61 = vld [vmem:[#allocation6 + $0xf4] ss:$8 sps:$4 sm:$0xff]  }
  0x5e   :  { %v1937_v62 = vld [vmem:[#allocation6 + $0x1f4] ss:$8 sps:$4 sm:$0xff]   ;;  %v1939_v63 = vld [vmem:[#allocation6 + $0xf0] ss:$8 sps:$4 sm:$0xff]   ;;  %v1946_v1 = vld [vmem:[#allocation8 + $0x4] ss:$8 sps:$4 sm:$0xff]  }
  0x5f   :  { %v1940_v0 = vld [vmem:[#allocation6 + $0x1f0] ss:$8 sps:$4 sm:$0xff]   ;;  %v1949_v2 = vld [vmem:[#allocation8 + $0x104] ss:$8 sps:$4 sm:$0xff]   ;;  %v1944_v4 = vld [vmem:[#allocation8] ss:$8 sps:$4 sm:$0xff]  }
  0x60   :  { %v2396_v3 = vld [vmem:[#allocation3] ss:$8 sps:$4 sm:$0xff]   ;;  %v1947_v5 = vld [vmem:[#allocation8 + $0x100] ss:$8 sps:$4 sm:$0xff]   ;;  %v1952_v6 = vld [vmem:[#allocation8 + $0x14] ss:$8 sps:$4 sm:$0xff]  }
  0x61   :  { %v1955_v7 = vld [vmem:[#allocation8 + $0x114] ss:$8 sps:$4 sm:$0xff]   ;;  %v1950_v8 = vld [vmem:[#allocation8 + $0x10] ss:$8 sps:$4 sm:$0xff]   ;;  %v1958_v10 = vld [vmem:[#allocation8 + $0x24] ss:$8 sps:$4 sm:$0xff]  }
  0x62   :  { %v1953_v9 = vld [vmem:[#allocation8 + $0x110] ss:$8 sps:$4 sm:$0xff]   ;;  %v1961_v11 = vld [vmem:[#allocation8 + $0x124] ss:$8 sps:$4 sm:$0xff]   ;;  %v1956_v12 = vld [vmem:[#allocation8 + $0x20] ss:$8 sps:$4 sm:$0xff]  }
  0x63   :  { %505 = vmatpush1.bf16.xpose.msra.mxu0 %v1867_v14  ;;  %v1959_v13 = vld [vmem:[#allocation8 + $0x120] ss:$8 sps:$4 sm:$0xff]   ;;  %v1964_v14 = vld [vmem:[#allocation8 + $0x34] ss:$8 sps:$4 sm:$0xff]   ;;  %s2292_s3 = smov [#allocation11]  }
  0x64   :  { %548 = vmatpush1.bf16.xpose.msra.mxu1 %v1868_v15  ;;  %506 = vmatprep.subr.bf16.mxu0 %v1869_v16  ;;  %v1967_v15 = vld [vmem:[#allocation8 + $0x134] ss:$8 sps:$4 sm:$0xff]   ;;  %v1962_v16 = vld [vmem:[#allocation8 + $0x30] ss:$8 sps:$4 sm:$0xff]   ;;  %s1622_s12 = sshll.u32 %s2292_s3, 4  ;;  %s1623_s12 = int_to_ptr.vmem [resolvable:$true] %s1622_s12 }
  0x65   :  { %549 = vmatprep.subr.bf16.mxu1 %v1871_v17  ;;  %v1965_v17 = vld [vmem:[#allocation8 + $0x130] ss:$8 sps:$4 sm:$0xff]   ;;  %s2256_s1 = scalar_lea.vmem %s1623_s12, 256  ;;  %p2261_p5 = scmp.lt.s32.totalorder %s1623_s12, %s1623_s12 }
  0x66   :  { %p2257_p4 = scmp.ne.s32.totalorder %s1623_s12, %s2256_s1  ;;  %p2262_p6 = scmp.lt.s32.totalorder %s2256_s1, %s2256_s1 }
  0x68   :  { %p2263_p7 = por %p2262_p6, %p2261_p5 }
  0x6a   :  { %p2264_p8 = pnand %p2263_p7, %p2257_p4 }
  0x6b   :  { %507 = vmatpush1.bf16.xpose.msra.mxu0 %v1873_v18  ;;  %v1970_v18 = vld [vmem:[#allocation8 + $0x44] ss:$8 sps:$4 sm:$0xff]  }
  0x6c   :  { %550 = vmatpush1.bf16.xpose.msra.mxu1 %v1874_v19  ;;  %508 = vmatprep.subr.bf16.mxu0 %v1875_v20  ;;  %v1973_v19 = vld [vmem:[#allocation8 + $0x144] ss:$8 sps:$4 sm:$0xff]   ;;  %v1968_v20 = vld [vmem:[#allocation8 + $0x40] ss:$8 sps:$4 sm:$0xff]  }
  0x6d   :  { %551 = vmatprep.subr.bf16.mxu1 %v1877_v21  ;;  %v1971_v21 = vld [vmem:[#allocation8 + $0x140] ss:$8 sps:$4 sm:$0xff]  }
  0x73   :  { %509 = vmatpush1.bf16.xpose.msra.mxu0 %v1879_v22  ;;  %v1976_v22 = vld [vmem:[#allocation8 + $0x54] ss:$8 sps:$4 sm:$0xff]  }
  0x74   :  { %552 = vmatpush1.bf16.xpose.msra.mxu1 %v1880_v23  ;;  %510 = vmatprep.subr.bf16.mxu0 %v1881_v24  ;;  %v1979_v23 = vld [vmem:[#allocation8 + $0x154] ss:$8 sps:$4 sm:$0xff]   ;;  %v1974_v24 = vld [vmem:[#allocation8 + $0x50] ss:$8 sps:$4 sm:$0xff]  }
  0x75   :  { %553 = vmatprep.subr.bf16.mxu1 %v1883_v25  ;;  %v1977_v25 = vld [vmem:[#allocation8 + $0x150] ss:$8 sps:$4 sm:$0xff]  }
  0x7b   :  { %511 = vmatpush1.bf16.xpose.msra.mxu0 %v1885_v27  ;;  %v1985_v27 = vld [vmem:[#allocation8 + $0x164] ss:$8 sps:$4 sm:$0xff]  }
  0x7c   :  { %554 = vmatpush1.bf16.xpose.msra.mxu1 %v1886_v28  ;;  %512 = vmatprep.subr.bf16.mxu0 %v1887_v29  ;;  %v1980_v28 = vld [vmem:[#allocation8 + $0x60] ss:$8 sps:$4 sm:$0xff]  }
  0x7d   :  { %555 = vmatprep.subr.bf16.mxu1 %v1889_v30  ;;  %v1983_v29 = vld [vmem:[#allocation8 + $0x160] ss:$8 sps:$4 sm:$0xff]   ;;  %v1988_v30 = vld [vmem:[#allocation8 + $0x74] ss:$8 sps:$4 sm:$0xff]  }
  0x83   :  { %513 = vmatpush1.bf16.xpose.msra.mxu0 %v1891_v31  ;;  %v1991_v31 = vld [vmem:[#allocation8 + $0x174] ss:$8 sps:$4 sm:$0xff]  }
  0x84   :  { %556 = vmatpush1.bf16.xpose.msra.mxu1 %v1892_v32  ;;  %514 = vmatprep.subr.bf16.mxu0 %v1893_v33  ;;  %v1986_v32 = vld [vmem:[#allocation8 + $0x70] ss:$8 sps:$4 sm:$0xff]  }
  0x85   :  { %557 = vmatprep.subr.bf16.mxu1 %v1895_v34  ;;  %v1989_v33 = vld [vmem:[#allocation8 + $0x170] ss:$8 sps:$4 sm:$0xff]   ;;  %v1994_v34 = vld [vmem:[#allocation8 + $0x84] ss:$8 sps:$4 sm:$0xff]  }
  0x8b   :  { %515 = vmatpush1.bf16.xpose.msra.mxu0 %v1897_v35  ;;  %v1997_v35 = vld [vmem:[#allocation8 + $0x184] ss:$8 sps:$4 sm:$0xff]  }
  0x8c   :  { %558 = vmatpush1.bf16.xpose.msra.mxu1 %v1898_v36  ;;  %516 = vmatprep.subr.bf16.mxu0 %v1899_v37  ;;  %v1992_v36 = vld [vmem:[#allocation8 + $0x80] ss:$8 sps:$4 sm:$0xff]  }
  0x8d   :  { %559 = vmatprep.subr.bf16.mxu1 %v1901_v38  ;;  %v1995_v37 = vld [vmem:[#allocation8 + $0x180] ss:$8 sps:$4 sm:$0xff]   ;;  %v2000_v38 = vld [vmem:[#allocation8 + $0x94] ss:$8 sps:$4 sm:$0xff]  }
  0x93   :  { %517 = vmatpush1.bf16.xpose.msra.mxu0 %v1903_v39  ;;  %v2003_v39 = vld [vmem:[#allocation8 + $0x194] ss:$8 sps:$4 sm:$0xff]  }
  0x94   :  { %560 = vmatpush1.bf16.xpose.msra.mxu1 %v1904_v40  ;;  %518 = vmatprep.subr.bf16.mxu0 %v1905_v41  ;;  %v1998_v40 = vld [vmem:[#allocation8 + $0x90] ss:$8 sps:$4 sm:$0xff]  }
  0x95   :  { %561 = vmatprep.subr.bf16.mxu1 %v1907_v42  ;;  %v2001_v41 = vld [vmem:[#allocation8 + $0x190] ss:$8 sps:$4 sm:$0xff]   ;;  %v2006_v42 = vld [vmem:[#allocation8 + $0xa4] ss:$8 sps:$4 sm:$0xff]  }
  0x9b   :  { %519 = vmatpush1.bf16.xpose.msra.mxu0 %v1909_v43  ;;  %v2009_v43 = vld [vmem:[#allocation8 + $0x1a4] ss:$8 sps:$4 sm:$0xff]  }
  0x9c   :  { %562 = vmatpush1.bf16.xpose.msra.mxu1 %v1910_v44  ;;  %520 = vmatprep.subr.bf16.mxu0 %v1911_v45  ;;  %v2004_v44 = vld [vmem:[#allocation8 + $0xa0] ss:$8 sps:$4 sm:$0xff]  }
  0x9d   :  { %563 = vmatprep.subr.bf16.mxu1 %v1913_v46  ;;  %v2007_v45 = vld [vmem:[#allocation8 + $0x1a0] ss:$8 sps:$4 sm:$0xff]   ;;  %v2012_v46 = vld [vmem:[#allocation8 + $0xb4] ss:$8 sps:$4 sm:$0xff]  }
  0xa3   :  { %521 = vmatpush1.bf16.xpose.msra.mxu0 %v1915_v47  ;;  %v2015_v47 = vld [vmem:[#allocation8 + $0x1b4] ss:$8 sps:$4 sm:$0xff]  }
  0xa4   :  { %564 = vmatpush1.bf16.xpose.msra.mxu1 %v1916_v48  ;;  %522 = vmatprep.subr.bf16.mxu0 %v1917_v49  ;;  %v2010_v48 = vld [vmem:[#allocation8 + $0xb0] ss:$8 sps:$4 sm:$0xff]  }
  0xa5   :  { %565 = vmatprep.subr.bf16.mxu1 %v1919_v50  ;;  %v2013_v49 = vld [vmem:[#allocation8 + $0x1b0] ss:$8 sps:$4 sm:$0xff]   ;;  %v2018_v50 = vld [vmem:[#allocation8 + $0xc4] ss:$8 sps:$4 sm:$0xff]  }
  0xab   :  { %523 = vmatpush1.bf16.xpose.msra.mxu0 %v1921_v51  ;;  %v2021_v51 = vld [vmem:[#allocation8 + $0x1c4] ss:$8 sps:$4 sm:$0xff]  }
  0xac   :  { %566 = vmatpush1.bf16.xpose.msra.mxu1 %v1922_v52  ;;  %524 = vmatprep.subr.bf16.mxu0 %v1923_v53  ;;  %v2016_v52 = vld [vmem:[#allocation8 + $0xc0] ss:$8 sps:$4 sm:$0xff]  }
  0xad   :  { %567 = vmatprep.subr.bf16.mxu1 %v1925_v54  ;;  %v2019_v53 = vld [vmem:[#allocation8 + $0x1c0] ss:$8 sps:$4 sm:$0xff]   ;;  %v2024_v54 = vld [vmem:[#allocation8 + $0xd4] ss:$8 sps:$4 sm:$0xff]  }
  0xb3   :  { %525 = vmatpush1.bf16.xpose.msra.mxu0 %v1927_v55  ;;  %v2027_v55 = vld [vmem:[#allocation8 + $0x1d4] ss:$8 sps:$4 sm:$0xff]  }
  0xb4   :  { %568 = vmatpush1.bf16.xpose.msra.mxu1 %v1928_v56  ;;  %526 = vmatprep.subr.bf16.mxu0 %v1929_v57  ;;  %v2022_v56 = vld [vmem:[#allocation8 + $0xd0] ss:$8 sps:$4 sm:$0xff]  }
  0xb5   :  { %569 = vmatprep.subr.bf16.mxu1 %v1931_v58  ;;  %v2025_v57 = vld [vmem:[#allocation8 + $0x1d0] ss:$8 sps:$4 sm:$0xff]   ;;  %v2030_v58 = vld [vmem:[#allocation8 + $0xe4] ss:$8 sps:$4 sm:$0xff]  }
  0xbb   :  { %527 = vmatpush1.bf16.xpose.msra.mxu0 %v1933_v59  ;;  %v2033_v59 = vld [vmem:[#allocation8 + $0x1e4] ss:$8 sps:$4 sm:$0xff]  }
  0xbc   :  { %570 = vmatpush1.bf16.xpose.msra.mxu1 %v1934_v60  ;;  %528 = vmatprep.subr.bf16.mxu0 %v1935_v61  ;;  %v2028_v60 = vld [vmem:[#allocation8 + $0xe0] ss:$8 sps:$4 sm:$0xff]  }
  0xbd   :  { %571 = vmatprep.subr.bf16.mxu1 %v1937_v62  ;;  %v2031_v61 = vld [vmem:[#allocation8 + $0x1e0] ss:$8 sps:$4 sm:$0xff]   ;;  %v2036_v62 = vld [vmem:[#allocation8 + $0xf4] ss:$8 sps:$4 sm:$0xff]  }
  0xc3   :  { %529 = vmatpush1.bf16.xpose.msra.mxu0 %v1939_v63  ;;  %v2039_v63 = vld [vmem:[#allocation8 + $0x1f4] ss:$8 sps:$4 sm:$0xff]  }
  0xc4   :  { %572 = vmatpush1.bf16.xpose.msra.mxu1 %v1940_v0  ;;  %968 = vmatprep.subr.bf16.mxu0 %v1946_v1  ;;  %v2034_v0 = vld [vmem:[#allocation8 + $0xf0] ss:$8 sps:$4 sm:$0xff]  }
  0xc5   :  { %1011 = vmatprep.subr.bf16.mxu1 %v1949_v2  ;;  %v2037_v1 = vld [vmem:[#allocation8 + $0x1f0] ss:$8 sps:$4 sm:$0xff]   ;;  %v2042_v2 = vld [vmem:[#allocation9 + $0x4] ss:$8 sps:$4 sm:$0xff]  }
  0xca   :  { %531 = vmatmul.mubr.bf16.vlgmr.msra.gmra.mrb[0].mxu0 %v2396_v3 }
  0xcb   :  { %574 = vmatmul.mubr.bf16.vlgmr.msra.gmra.mrb[0].mxu1 %v2396_v3  ;;  %969 = vmatpush1.bf16.xpose.msra.mxu0 %v1944_v4  ;;  %v2045_v4 = vld [vmem:[#allocation9 + $0x104] ss:$8 sps:$4 sm:$0xff]  }
  0xcc   :  { %1012 = vmatpush1.bf16.xpose.msra.mxu1 %v1947_v5  ;;  %970 = vmatprep.subr.bf16.mxu0 %v1952_v6  ;;  %v2040_v5 = vld [vmem:[#allocation9] ss:$8 sps:$4 sm:$0xff]  }
  0xcd   :  { %1013 = vmatprep.subr.bf16.mxu1 %v1955_v7  ;;  %1000 = vmatprep.mubr.bf16.mxu0 %v2392_v26  ;;  %v2043_v6 = vld [vmem:[#allocation9 + $0x100] ss:$8 sps:$4 sm:$0xff]   ;;  %v2048_v7 = vld [vmem:[#allocation9 + $0x14] ss:$8 sps:$4 sm:$0xff]  }
  0xce   :  { %1043 = vmatprep.mubr.bf16.mxu1 %v2392_v26  ;;  %v1982_v26 = vld [vmem:[#allocation8 + $0x64] ss:$8 sps:$4 sm:$0xff]  }
  0xd3   :  { %971 = vmatpush1.bf16.xpose.msra.mxu0 %v1950_v8  ;;  %v2051_v8 = vld [vmem:[#allocation9 + $0x114] ss:$8 sps:$4 sm:$0xff]  }
  0xd4   :  { %1014 = vmatpush1.bf16.xpose.msra.mxu1 %v1953_v9  ;;  %972 = vmatprep.subr.bf16.mxu0 %v1958_v10  ;;  %v2046_v9 = vld [vmem:[#allocation9 + $0x10] ss:$8 sps:$4 sm:$0xff]  }
  0xd5   :  { %1015 = vmatprep.subr.bf16.mxu1 %v1961_v11  ;;  %v2049_v10 = vld [vmem:[#allocation9 + $0x110] ss:$8 sps:$4 sm:$0xff]   ;;  %v2054_v11 = vld [vmem:[#allocation9 + $0x24] ss:$8 sps:$4 sm:$0xff]  }
  0xdb   :  { %973 = vmatpush1.bf16.xpose.msra.mxu0 %v1956_v12  ;;  %v2057_v12 = vld [vmem:[#allocation9 + $0x124] ss:$8 sps:$4 sm:$0xff]  }
  0xdc   :  { %1016 = vmatpush1.bf16.xpose.msra.mxu1 %v1959_v13  ;;  %974 = vmatprep.subr.bf16.mxu0 %v1964_v14  ;;  %v2052_v13 = vld [vmem:[#allocation9 + $0x20] ss:$8 sps:$4 sm:$0xff]  }
  0xdd   :  { %1017 = vmatprep.subr.bf16.mxu1 %v1967_v15  ;;  %v2055_v14 = vld [vmem:[#allocation9 + $0x120] ss:$8 sps:$4 sm:$0xff]   ;;  %v2060_v15 = vld [vmem:[#allocation9 + $0x34] ss:$8 sps:$4 sm:$0xff]  }
  0xe3   :  { %975 = vmatpush1.bf16.xpose.msra.mxu0 %v1962_v16  ;;  %v2063_v16 = vld [vmem:[#allocation9 + $0x134] ss:$8 sps:$4 sm:$0xff]  }
  0xe4   :  { %1018 = vmatpush1.bf16.xpose.msra.mxu1 %v1965_v17  ;;  %976 = vmatprep.subr.bf16.mxu0 %v1970_v18  ;;  %v2058_v17 = vld [vmem:[#allocation9 + $0x30] ss:$8 sps:$4 sm:$0xff]   ;;  %v2066_v18 = vld [vmem:[#allocation9 + $0x44] ss:$8 sps:$4 sm:$0xff]  }
  0xe5   :  { %1019 = vmatprep.subr.bf16.mxu1 %v1973_v19  ;;  %v2069_v19 = vld [vmem:[#allocation9 + $0x144] ss:$8 sps:$4 sm:$0xff]  }
  0xeb   :  { %977 = vmatpush1.bf16.xpose.msra.mxu0 %v1968_v20  ;;  %v2064_v20 = vld [vmem:[#allocation9 + $0x40] ss:$8 sps:$4 sm:$0xff]  }
  0xec   :  { %1020 = vmatpush1.bf16.xpose.msra.mxu1 %v1971_v21  ;;  %978 = vmatprep.subr.bf16.mxu0 %v1976_v22  ;;  %v2067_v21 = vld [vmem:[#allocation9 + $0x140] ss:$8 sps:$4 sm:$0xff]   ;;  %v2072_v22 = vld [vmem:[#allocation9 + $0x54] ss:$8 sps:$4 sm:$0xff]  }
  0xed   :  { %1021 = vmatprep.subr.bf16.mxu1 %v1979_v23  ;;  %v2075_v23 = vld [vmem:[#allocation9 + $0x154] ss:$8 sps:$4 sm:$0xff]  }
  0xf3   :  { %979 = vmatpush1.bf16.xpose.msra.mxu0 %v1974_v24  ;;  %v2070_v24 = vld [vmem:[#allocation9 + $0x50] ss:$8 sps:$4 sm:$0xff]  }
  0xf4   :  { %1022 = vmatpush1.bf16.xpose.msra.mxu1 %v1977_v25  ;;  %980 = vmatprep.subr.bf16.mxu0 %v1982_v26  ;;  %v2073_v25 = vld [vmem:[#allocation9 + $0x150] ss:$8 sps:$4 sm:$0xff]   ;;  %v2078_v26 = vld [vmem:[#allocation9 + $0x64] ss:$8 sps:$4 sm:$0xff]  }
  0xf5   :  { %1023 = vmatprep.subr.bf16.mxu1 %v1985_v27  ;;  %v2081_v27 = vld [vmem:[#allocation9 + $0x164] ss:$8 sps:$4 sm:$0xff]  }
  0xfb   :  { %981 = vmatpush1.bf16.xpose.msra.mxu0 %v1980_v28  ;;  %v2076_v28 = vld [vmem:[#allocation9 + $0x60] ss:$8 sps:$4 sm:$0xff]  }
  0xfc   :  { %1024 = vmatpush1.bf16.xpose.msra.mxu1 %v1983_v29  ;;  %982 = vmatprep.subr.bf16.mxu0 %v1988_v30  ;;  %v2079_v29 = vld [vmem:[#allocation9 + $0x160] ss:$8 sps:$4 sm:$0xff]   ;;  %v2084_v30 = vld [vmem:[#allocation9 + $0x74] ss:$8 sps:$4 sm:$0xff]  }
  0xfd   :  { %1025 = vmatprep.subr.bf16.mxu1 %v1991_v31  ;;  %v2087_v31 = vld [vmem:[#allocation9 + $0x174] ss:$8 sps:$4 sm:$0xff]  }
 0x103   :  { %983 = vmatpush1.bf16.xpose.msra.mxu0 %v1986_v32  ;;  %v2082_v32 = vld [vmem:[#allocation9 + $0x70] ss:$8 sps:$4 sm:$0xff]  }
 0x104   :  { %1026 = vmatpush1.bf16.xpose.msra.mxu1 %v1989_v33  ;;  %984 = vmatprep.subr.bf16.mxu0 %v1994_v34  ;;  %v2085_v33 = vld [vmem:[#allocation9 + $0x170] ss:$8 sps:$4 sm:$0xff]   ;;  %v2090_v34 = vld [vmem:[#allocation9 + $0x84] ss:$8 sps:$4 sm:$0xff]  }
 0x105   :  { %1027 = vmatprep.subr.bf16.mxu1 %v1997_v35  ;;  %v2093_v35 = vld [vmem:[#allocation9 + $0x184] ss:$8 sps:$4 sm:$0xff]  }
 0x10b   :  { %985 = vmatpush1.bf16.xpose.msra.mxu0 %v1992_v36  ;;  %v2088_v36 = vld [vmem:[#allocation9 + $0x80] ss:$8 sps:$4 sm:$0xff]  }
 0x10c   :  { %1028 = vmatpush1.bf16.xpose.msra.mxu1 %v1995_v37  ;;  %986 = vmatprep.subr.bf16.mxu0 %v2000_v38  ;;  %v2091_v37 = vld [vmem:[#allocation9 + $0x180] ss:$8 sps:$4 sm:$0xff]   ;;  %v2096_v38 = vld [vmem:[#allocation9 + $0x94] ss:$8 sps:$4 sm:$0xff]  }
 0x10d   :  { %1029 = vmatprep.subr.bf16.mxu1 %v2003_v39  ;;  %v2099_v39 = vld [vmem:[#allocation9 + $0x194] ss:$8 sps:$4 sm:$0xff]  }
 0x113   :  { %987 = vmatpush1.bf16.xpose.msra.mxu0 %v1998_v40  ;;  %v2094_v40 = vld [vmem:[#allocation9 + $0x90] ss:$8 sps:$4 sm:$0xff]  }
 0x114   :  { %1030 = vmatpush1.bf16.xpose.msra.mxu1 %v2001_v41  ;;  %988 = vmatprep.subr.bf16.mxu0 %v2006_v42  ;;  %v2097_v41 = vld [vmem:[#allocation9 + $0x190] ss:$8 sps:$4 sm:$0xff]   ;;  %v2102_v42 = vld [vmem:[#allocation9 + $0xa4] ss:$8 sps:$4 sm:$0xff]  }
 0x115   :  { %1031 = vmatprep.subr.bf16.mxu1 %v2009_v43  ;;  %v2105_v43 = vld [vmem:[#allocation9 + $0x1a4] ss:$8 sps:$4 sm:$0xff]  }
 0x11b   :  { %989 = vmatpush1.bf16.xpose.msra.mxu0 %v2004_v44  ;;  %v2100_v44 = vld [vmem:[#allocation9 + $0xa0] ss:$8 sps:$4 sm:$0xff]  }
 0x11c   :  { %1032 = vmatpush1.bf16.xpose.msra.mxu1 %v2007_v45  ;;  %990 = vmatprep.subr.bf16.mxu0 %v2012_v46  ;;  %v2103_v45 = vld [vmem:[#allocation9 + $0x1a0] ss:$8 sps:$4 sm:$0xff]   ;;  %v2108_v46 = vld [vmem:[#allocation9 + $0xb4] ss:$8 sps:$4 sm:$0xff]  }
 0x11d   :  { %1033 = vmatprep.subr.bf16.mxu1 %v2015_v47  ;;  %v2111_v47 = vld [vmem:[#allocation9 + $0x1b4] ss:$8 sps:$4 sm:$0xff]  }
 0x123   :  { %991 = vmatpush1.bf16.xpose.msra.mxu0 %v2010_v48  ;;  %v2106_v48 = vld [vmem:[#allocation9 + $0xb0] ss:$8 sps:$4 sm:$0xff]  }
 0x124   :  { %1034 = vmatpush1.bf16.xpose.msra.mxu1 %v2013_v49  ;;  %992 = vmatprep.subr.bf16.mxu0 %v2018_v50  ;;  %v2109_v49 = vld [vmem:[#allocation9 + $0x1b0] ss:$8 sps:$4 sm:$0xff]   ;;  %v2114_v50 = vld [vmem:[#allocation9 + $0xc4] ss:$8 sps:$4 sm:$0xff]  }
 0x125   :  { %1035 = vmatprep.subr.bf16.mxu1 %v2021_v51  ;;  %v2117_v51 = vld [vmem:[#allocation9 + $0x1c4] ss:$8 sps:$4 sm:$0xff]  }
 0x12b   :  { %993 = vmatpush1.bf16.xpose.msra.mxu0 %v2016_v52  ;;  %v2112_v52 = vld [vmem:[#allocation9 + $0xc0] ss:$8 sps:$4 sm:$0xff]  }
 0x12c   :  { %1036 = vmatpush1.bf16.xpose.msra.mxu1 %v2019_v53  ;;  %994 = vmatprep.subr.bf16.mxu0 %v2024_v54  ;;  %v2115_v53 = vld [vmem:[#allocation9 + $0x1c0] ss:$8 sps:$4 sm:$0xff]   ;;  %v2120_v54 = vld [vmem:[#allocation9 + $0xd4] ss:$8 sps:$4 sm:$0xff]  }
 0x12d   :  { %1037 = vmatprep.subr.bf16.mxu1 %v2027_v55  ;;  %v2123_v55 = vld [vmem:[#allocation9 + $0x1d4] ss:$8 sps:$4 sm:$0xff]  }
 0x133   :  { %995 = vmatpush1.bf16.xpose.msra.mxu0 %v2022_v56  ;;  %v2118_v56 = vld [vmem:[#allocation9 + $0xd0] ss:$8 sps:$4 sm:$0xff]  }
 0x134   :  { %1038 = vmatpush1.bf16.xpose.msra.mxu1 %v2025_v57  ;;  %996 = vmatprep.subr.bf16.mxu0 %v2030_v58  ;;  %v2121_v57 = vld [vmem:[#allocation9 + $0x1d0] ss:$8 sps:$4 sm:$0xff]  }
 0x135   :  { %1039 = vmatprep.subr.bf16.mxu1 %v2033_v59 }
 0x13b   :  { %997 = vmatpush1.bf16.xpose.msra.mxu0 %v2028_v60 }
 0x13c   :  { %1040 = vmatpush1.bf16.xpose.msra.mxu1 %v2031_v61  ;;  %998 = vmatprep.subr.bf16.mxu0 %v2036_v62 }
 0x13d   :  { %1041 = vmatprep.subr.bf16.mxu1 %v2039_v63 }
 0x143   :  { %999 = vmatpush1.bf16.xpose.msra.mxu0 %v2034_v0 }
 0x144   :  { %1042 = vmatpush1.bf16.xpose.msra.mxu1 %v2037_v1  ;;  %1545 = vmatprep.subr.bf16.mxu0 %v2045_v4  ;;  %v2126_v4 = vld [vmem:[#allocation9 + $0xe4] ss:$8 sps:$4 sm:$0xff]  }
 0x145   :  { %1502 = vmatprep.subr.bf16.mxu1 %v2042_v2  ;;  %v2124_v2 = vld [vmem:[#allocation9 + $0xe0] ss:$8 sps:$4 sm:$0xff]  }
 0x14a   :  { %1001 = vmatmul.mubr.bf16.vlgmr.msra.gmra.mrb[4].mxu0 %v2396_v3 }
 0x14b   :  { %1044 = vmatmul.mubr.bf16.vlgmr.msra.gmra.mrb[4].mxu1 %v2396_v3  ;;  %1546 = vmatpush1.bf16.msra.mxu0 %v2043_v6  ;;  %v2061_v3 = vld [vmem:[#allocation9 + $0x130] ss:$8 sps:$4 sm:$0xff]   ;;  %v2129_v6 = vld [vmem:[#allocation9 + $0x1e4] ss:$8 sps:$4 sm:$0xff]  }
 0x14c   :  { %1503 = vmatpush1.bf16.msra.mxu1 %v2040_v5  ;;  %1547 = vmatprep.subr.bf16.mxu0 %v2051_v8  ;;  %v2127_v5 = vld [vmem:[#allocation9 + $0x1e0] ss:$8 sps:$4 sm:$0xff]   ;;  %v2130_v8 = vld [vmem:[#allocation9 + $0xf0] ss:$8 sps:$4 sm:$0xff]  }
 0x14d   :  { %1504 = vmatprep.subr.bf16.mxu1 %v2048_v7  ;;  %v2132_v7 = vld [vmem:[#allocation9 + $0xf4] ss:$8 sps:$4 sm:$0xff]  }
 0x14f   :  { %1548 = vmatpush1.bf16.msra.mxu0 %v2049_v10  ;;  %v2133_v10 = vld [vmem:[#allocation9 + $0x1f0] ss:$8 sps:$4 sm:$0xff]  }
 0x150   :  { %1505 = vmatpush1.bf16.msra.mxu1 %v2046_v9  ;;  %1549 = vmatprep.subr.bf16.mxu0 %v2057_v12  ;;  %v2135_v9 = vld [vmem:[#allocation9 + $0x1f4] ss:$8 sps:$4 sm:$0xff]  }
 0x151   :  { %1506 = vmatprep.subr.bf16.mxu1 %v2054_v11 }
 0x153   :  { %1550 = vmatpush1.bf16.msra.mxu0 %v2055_v14 }
 0x154   :  { %1507 = vmatpush1.bf16.msra.mxu1 %v2052_v13  ;;  %1551 = vmatprep.subr.bf16.mxu0 %v2063_v16 }
 0x155   :  { %1508 = vmatprep.subr.bf16.mxu1 %v2060_v15 }
 0x157   :  { %1552 = vmatpush1.bf16.msra.mxu0 %v2061_v3 }
 0x158   :  { %1509 = vmatpush1.bf16.msra.mxu1 %v2058_v17  ;;  %1553 = vmatprep.subr.bf16.mxu0 %v2069_v19 }
 0x159   :  { %1510 = vmatprep.subr.bf16.mxu1 %v2066_v18 }
 0x15b   :  { %1554 = vmatpush1.bf16.msra.mxu0 %v2067_v21 }
 0x15c   :  { %1511 = vmatpush1.bf16.msra.mxu1 %v2064_v20  ;;  %1555 = vmatprep.subr.bf16.mxu0 %v2075_v23 }
 0x15d   :  { %1512 = vmatprep.subr.bf16.mxu1 %v2072_v22 }
 0x15f   :  { %1556 = vmatpush1.bf16.msra.mxu0 %v2073_v25 }
 0x160   :  { %1513 = vmatpush1.bf16.msra.mxu1 %v2070_v24  ;;  %1557 = vmatprep.subr.bf16.mxu0 %v2081_v27 }
 0x161   :  { %1514 = vmatprep.subr.bf16.mxu1 %v2078_v26 }
 0x163   :  { %1558 = vmatpush1.bf16.msra.mxu0 %v2079_v29 }
 0x164   :  { %1515 = vmatpush1.bf16.msra.mxu1 %v2076_v28  ;;  %1559 = vmatprep.subr.bf16.mxu0 %v2087_v31 }
 0x165   :  { %1516 = vmatprep.subr.bf16.mxu1 %v2084_v30 }
 0x167   :  { %1560 = vmatpush1.bf16.msra.mxu0 %v2085_v33 }
 0x168   :  { %1517 = vmatpush1.bf16.msra.mxu1 %v2082_v32  ;;  %1561 = vmatprep.subr.bf16.mxu0 %v2093_v35 }
 0x169   :  { %1518 = vmatprep.subr.bf16.mxu1 %v2090_v34 }
 0x16b   :  { %1562 = vmatpush1.bf16.msra.mxu0 %v2091_v37 }
 0x16c   :  { %1519 = vmatpush1.bf16.msra.mxu1 %v2088_v36  ;;  %1563 = vmatprep.subr.bf16.mxu0 %v2099_v39 }
 0x16d   :  { %1520 = vmatprep.subr.bf16.mxu1 %v2096_v38 }
 0x16f   :  { %1564 = vmatpush1.bf16.msra.mxu0 %v2097_v41 }
 0x170   :  { %1521 = vmatpush1.bf16.msra.mxu1 %v2094_v40  ;;  %1565 = vmatprep.subr.bf16.mxu0 %v2105_v43 }
 0x171   :  { %1522 = vmatprep.subr.bf16.mxu1 %v2102_v42 }
 0x173   :  { %1566 = vmatpush1.bf16.msra.mxu0 %v2103_v45 }
 0x174   :  { %1523 = vmatpush1.bf16.msra.mxu1 %v2100_v44  ;;  %1567 = vmatprep.subr.bf16.mxu0 %v2111_v47 }
 0x175   :  { %1524 = vmatprep.subr.bf16.mxu1 %v2108_v46 }
 0x177   :  { %1568 = vmatpush1.bf16.msra.mxu0 %v2109_v49 }
 0x178   :  { %1525 = vmatpush1.bf16.msra.mxu1 %v2106_v48  ;;  %1569 = vmatprep.subr.bf16.mxu0 %v2117_v51 }
 0x179   :  { %1526 = vmatprep.subr.bf16.mxu1 %v2114_v50 }
 0x17b   :  { %1570 = vmatpush1.bf16.msra.mxu0 %v2115_v53 }
 0x17c   :  { %1527 = vmatpush1.bf16.msra.mxu1 %v2112_v52  ;;  %1571 = vmatprep.subr.bf16.mxu0 %v2123_v55 }
 0x17d   :  { %1528 = vmatprep.subr.bf16.mxu1 %v2120_v54 }
 0x17f   :  { %1572 = vmatpush1.bf16.msra.mxu0 %v2121_v57 }
 0x180   :  { %1529 = vmatpush1.bf16.msra.mxu1 %v2118_v56  ;;  %1573 = vmatprep.subr.bf16.mxu0 %v2129_v6 }
 0x181   :  { %1530 = vmatprep.subr.bf16.mxu1 %v2126_v4 }
 0x183   :  { %1574 = vmatpush1.bf16.msra.mxu0 %v2127_v5 }
 0x184   :  { %1531 = vmatpush1.bf16.msra.mxu1 %v2124_v2  ;;  %1575 = vmatprep.subr.bf16.mxu0 %v2135_v9 }
 0x185   :  { %1532 = vmatprep.subr.bf16.mxu1 %v2132_v7 }
 0x187   :  { %1576 = vmatpush1.bf16.msra.mxu0 %v2133_v10 }
 0x188   :  { %1533 = vmatpush1.bf16.msra.mxu1 %v2130_v8 }
 0x19d   :  { %v2404_v58 = vpop.f32.mrb[0].mxu0 }
 0x19e   :  { %v2406_v59 = vpop.f32.mrb[0].mxu1  ;;  %v2408_v60 = vpop.f32.mrb[1].mxu0  ;;  %v1054_v11 = vsub.f32 0.0, %v2404_v58 }
 0x19f   :  { %v2410_v61 = vpop.f32.mrb[1].mxu1  ;;  %v2412_v62 = vpop.f32.mrb[2].mxu0  ;;  %v1056_v12 = vsub.f32 0.0, %v2406_v59  ;;  %v1055_v13 = vsub.f32 0.0, %v2408_v60 }
 0x1a0   :  { %v2414_v63 = vpop.f32.mrb[2].mxu1  ;;  %v2416_v0 = vpop.f32.mrb[3].mxu0  ;;  %v1057_v14 = vsub.f32 0.0, %v2410_v61  ;;  %v1062_v15 = vmul.f32 1.442695, %v1054_v11  ;;  %v1058_v16 = vsub.f32 0.0, %v2412_v62 }
 0x1a1   :  { %v2418_v1 = vpop.f32.mrb[3].mxu1  ;;  %v1066_v17 = vmul.f32 1.442695, %v1056_v12  ;;  %v1060_v3 = vsub.f32 0.0, %v2414_v63  ;;  %v1064_v18 = vmul.f32 1.442695, %v1055_v13 }
 0x1a2   :  { %v1059_v19 = vsub.f32 0.0, %v2416_v0  ;;  %v1068_v20 = vmul.f32 1.442695, %v1057_v14  ;;  %v1061_v21 = vsub.f32 0.0, %v2418_v1  ;;  %2136 = vpow2.f32 %v1062_v15 }
 0x1a3   :  { %v1070_v22 = vmul.f32 1.442695, %v1058_v16  ;;  %2138 = vpow2.f32 %v1066_v17  ;;  %v1074_v23 = vmul.f32 1.442695, %v1060_v3 }
 0x1a4   :  { %2140 = vpow2.f32 %v1064_v18  ;;  %v1072_v24 = vmul.f32 1.442695, %v1059_v19  ;;  %v1076_v25 = vmul.f32 1.442695, %v1061_v21 }
 0x1a5   :  { %2142 = vpow2.f32 %v1068_v20 }
 0x1a6   :  { %2144 = vpow2.f32 %v1070_v22 }
 0x1a7   :  { %2146 = vpow2.f32 %v1074_v23 }
 0x1a8   :  { %2148 = vpow2.f32 %v1072_v24 }
 0x1a9   :  { %2150 = vpow2.f32 %v1076_v25 }
 0x1ac   :  { %v2137_v26 = vpop.eup %2136 }
 0x1ad   :  { %v2139_v27 = vpop.eup %2138  ;;  %v1078_v30 = vadd.f32 1.0, %v2137_v26 }
 0x1ae   :  { %v2141_v28 = vpop.eup %2140  ;;  %v1080_v32 = vadd.f32 1.0, %v2139_v27 }
 0x1af   :  { %v2143_v29 = vpop.eup %2142  ;;  %v1079_v34 = vadd.f32 1.0, %v2141_v28  ;;  %2152 = vrcp.f32 %v1078_v30 }
 0x1b0   :  { %v2145_v31 = vpop.eup %2144  ;;  %v1081_v36 = vadd.f32 1.0, %v2143_v29  ;;  %2154 = vrcp.f32 %v1080_v32 }
 0x1b1   :  { %v2147_v33 = vpop.eup %2146  ;;  %v1082_v38 = vadd.f32 1.0, %v2145_v31  ;;  %2156 = vrcp.f32 %v1079_v34 }
 0x1b2   :  { %v2149_v35 = vpop.eup %2148  ;;  %v1084_v39 = vadd.f32 1.0, %v2147_v33  ;;  %2158 = vrcp.f32 %v1081_v36 }
 0x1b3   :  { %v2151_v37 = vpop.eup %2150  ;;  %v1083_v40 = vadd.f32 1.0, %v2149_v35  ;;  %2160 = vrcp.f32 %v1082_v38 }
 0x1b4   :  { %v1085_v41 = vadd.f32 1.0, %v2151_v37  ;;  %2162 = vrcp.f32 %v1084_v39 }
 0x1b5   :  { %2164 = vrcp.f32 %v1083_v40 }
 0x1b6   :  { %2166 = vrcp.f32 %v1085_v41 }
 0x1b9   :  { %v2153_v42 = vpop.eup %2152 }
 0x1ba   :  { %v2155_v43 = vpop.eup %2154  ;;  %v1094_v50 = vmul.f32 %v2153_v42, %v2404_v58 }
 0x1bb   :  { %v2157_v44 = vpop.eup %2156  ;;  %v1096_v51 = vmul.f32 %v2155_v43, %v2406_v59 }
 0x1bc   :  { %v2159_v45 = vpop.eup %2158  ;;  %v1095_v52 = vmul.f32 %v2157_v44, %v2408_v60 }
 0x1bd   :  { %v2161_v46 = vpop.eup %2160  ;;  %v1097_v53 = vmul.f32 %v2159_v45, %v2410_v61 }
 0x1be   :  { %v2163_v47 = vpop.eup %2162  ;;  %v1098_v56 = vmul.f32 %v2161_v46, %v2412_v62 }
 0x1bf   :  { %v2165_v48 = vpop.eup %2164  ;;  %v1100_v57 = vmul.f32 %v2163_v47, %v2414_v63 }
 0x1c0   :  { %v2167_v49 = vpop.eup %2166  ;;  %v1099_v7 = vmul.f32 %v2165_v48, %v2416_v0 }
 0x1c1   :  { %v1101_v58 = vmul.f32 %v2167_v49, %v2418_v1 }
 0x21d   :  { %v1002_v54 = vpop.f32.mrb[4].mxu0 }
 0x21e   :  { %v1045_v55 = vpop.f32.mrb[4].mxu1  ;;  %v1102_v2 = vmul.f32 %v1094_v50, %v1002_v54  ;;  %v1004_v5 = vpop.f32.mrb[5].mxu0 }
 0x21f   :  { %v1104_v4 = vmul.f32 %v1096_v51, %v1045_v55  ;;  %v1047_v6 = vpop.f32.mrb[5].mxu1  ;;  %v1103_v8 = vmul.f32 %v1095_v52, %v1004_v5  ;;  %v1006_v9 = vpop.f32.mrb[6].mxu0 }
 0x220   :  { %v1105_v59 = vmul.f32 %v1097_v53, %v1047_v6  ;;  %v1049_v60 = vpop.f32.mrb[6].mxu1  ;;  %v1106_v10 = vmul.f32 %v1098_v56, %v1006_v9  ;;  %v1008_v11 = vpop.f32.mrb[7].mxu0 }
 0x221   :  { %v1108_v61 = vmul.f32 %v1100_v57, %v1049_v60  ;;  %v1051_v12 = vpop.f32.mrb[7].mxu1  ;;  %v1107_v13 = vmul.f32 %v1099_v7, %v1008_v11 }
 0x222   :  { %v1109_v62 = vmul.f32 %v1101_v58, %v1051_v12  ;;  %v1110_v14 = vpack.c.bf16 %v1106_v10, %v1102_v2 }
 0x223   :  { %v1112_v63 = vpack.c.bf16 %v1108_v61, %v1104_v4  ;;  %v1111_v15 = vpack.c.bf16 %v1107_v13, %v1103_v8 }
 0x224   :  { %v1113_v16 = vpack.c.bf16 %v1109_v62, %v1105_v59 }
 0x225   :  { %1534 = vmatprep.mubr.bf16.mxu1 %v1111_v15 }
 0x226   :  { %1577 = vmatprep.mubr.bf16.mxu0 %v1113_v16  ;;  %1535 = vmatmul.mubr.bf16.vlgmr.msra.gmra.mrb[8].mxu1 %v1110_v14 }
 0x227   :  { %1578 = vmatmul.mubr.bf16.vlgmr.msra.gmra.mrb[8].mxu0 %v1112_v63 }
 0x2f9   :  { %v1536_v0 = vpop.f32.mrb[8].mxu1 }
 0x2fa   :  { %v1579_v1 = vpop.f32.mrb[8].mxu0  ;;  %v1538_v3 = vpop.f32.mrb[9].mxu1 }
 0x2fb   :  { %v1580_v17 = vadd.f32 %v1579_v1, %v1536_v0  ;;  %v1581_v18 = vpop.f32.mrb[9].mxu0  ;;  %v1540_v20 = vpop.f32.mrb[10].mxu1 }
 0x2fc   :  { %v1582_v19 = vadd.f32 %v1581_v18, %v1538_v3  ;;  %v1583_v21 = vpop.f32.mrb[10].mxu0  ;;  %v1542_v23 = vpop.f32.mrb[11].mxu1 }
 0x2fd   :  { %v1584_v22 = vadd.f32 %v1583_v21, %v1540_v20  ;;  %v1585_v24 = vpop.f32.mrb[11].mxu0 }
 0x2fe   :  { %v1832_v25 = vpack.c.bf16 %v1582_v19, %v1580_v17  ;;  %v1586_v26 = vadd.f32 %v1585_v24, %v1542_v23 }
 0x300   :  { %1615 = vst [vmem:[#allocation11] sm:$0xff] %v1832_v25  ;;  %v1833_v27 = vpack.c.bf16 %v1586_v26, %v1584_v22 }
 0x302   :  { %1616 = vst [vmem:[#allocation11 + $0x8] sm:$0xff] %v1833_v27 }
 0x303   :  { %2267 = shalt.err (!%p2264_p8)
}
 0x304   :  { %s2268_s15 = scalar_lea.hbm %s2455_s4, 256 }
 0x305   :  { %p2269_p9 = scmp.ne.s32.totalorder %s2455_s4, %s2268_s15  ;;  %p2272_p10 = scmp.lt.u32.totalorder %s2268_s15, %s2455_s4 }
 0x307   :  { %p2274_p11 = pnand %p2272_p10, %p2269_p9 }
 0x309   :  { %2277 = shalt.err (!%p2274_p11)
}
 0x30a   :  { %1628 = dma.vmem_to_hbm [thread:$0]  %s1623_s12, 256, %s2455_s4, [#allocation5], %s2288_s27, %s2288_s27, %s2289_s28  }
 0x30b   :  { %2284 = dma.done.wait [#allocation5], 256  }
 0x30c   :  { %2285 = vsyncadd [#allocation5], 4294967040 }
 0x30d   :  { %1632 = vsyncpa [#allocation4], 1 }
 0x30e   :  { %1633 = vsyncpa [#allocation7], 1 }
 0x30f   :  { %1634 = vsyncpa [#allocation10], 1 }
 0x310   :  { %1635 = vsyncpa [#allocation5], 1 }

</bundles_post_ra>
